<compile_context>
chip_gen: v6e
topology: v6e:2x2x1
jax: 0.10.0
libtpu: 0.0.40
codegen_flags: <defaults>
</compile_context>

<pallas_src>
import functools

import jax
import jax.numpy as jnp
import numpy as np
from jax.experimental import pallas as pl
from jax.experimental.pallas import tpu as pltpu

# ------------------------- static problem sizes -------------------------
H, W = 12, 15                       # input spatial (C = 1)
K = 12                              # Conv2d kernel size
STRIDE = 3                          # Conv2d stride
HW = H * W                          # 180 flattened input elements / sample
H_OUT = (H - K) // STRIDE + 1       # 1
W_OUT = (W - K) // STRIDE + 1       # 2
FLAT = H_OUT * W_OUT                # 2  == Linear in_features
LIN_OUT = 10                        # Linear out_features

X_ROWS = 184                        # HW (180) padded to a multiple of 8 sublanes
OUT_ROWS = 16                       # LIN_OUT (10) padded to a multiple of 8 sublanes
LIN_ROW0 = X_ROWS                   # slab row where linear weights/bias start (184)
CB_ROW0 = LIN_ROW0 + OUT_ROWS       # slab row holding the conv bias scalar (200)
SLAB_ROWS = CB_ROW0 + 8             # 208 (8-row aligned)
SLAB_LANES = 128
B_TILE = 128                        # samples per grid step, along the lane axis


# ------------------------------ kernel ----------------------------------
def fused_kernel(x_ref, slab_ref, out_ref):
    """Per-sample conv(12x12,s=3) -> relu -> linear(2->10) -> relu -> sigmoid.

    x_ref   : (X_ROWS, B_TILE)   flattened samples, lane-dense (rows 180..183 zero)
    slab_ref: (SLAB_ROWS, 128)   static weights:
        rows 0:180, lane 0 -> conv weights flattened for window @ col 0 (zeros c>=12)
        rows 0:180, lane 1 -> conv weights flattened for window @ col 3 (zeros c< 3)
        rows 184:194, lane 0 -> lin_w[:, 0];  lane 1 -> lin_w[:, 1];  lane 2 -> lin_b
        row  200,   lane 0 -> conv bias
    out_ref : (OUT_ROWS, B_TILE) rows 0:10 valid, rows 10:16 garbage (sliced off).
    """
    x = x_ref[...]                                         # (184, B)

    w0 = slab_ref[0:X_ROWS, 0:1]                           # (184, 1)
    w1 = slab_ref[0:X_ROWS, 1:2]                           # (184, 1)
    cb = slab_ref[CB_ROW0:CB_ROW0 + 1, 0:1]                # (1, 1) conv bias

    # conv: two stride-3 windows = two aligned full-tile multiplies + sublane reduces
    c0 = jnp.sum(x * w0, axis=0, keepdims=True) + cb       # (1, B)
    c1 = jnp.sum(x * w1, axis=0, keepdims=True) + cb       # (1, B)

    # relu (flatten is implicit: [c0, c1] are the two flattened conv outputs)
    r0 = jnp.maximum(c0, 0.0)
    r1 = jnp.maximum(c1, 0.0)

    # linear (K=2) as broadcast multiply-add; rows >= 10 have zero weights/bias
    lw0 = slab_ref[LIN_ROW0:LIN_ROW0 + OUT_ROWS, 0:1]      # (16, 1)
    lw1 = slab_ref[LIN_ROW0:LIN_ROW0 + OUT_ROWS, 1:2]      # (16, 1)
    lb = slab_ref[LIN_ROW0:LIN_ROW0 + OUT_ROWS, 2:3]       # (16, 1)
    y = lw0 * r0 + lw1 * r1 + lb                           # (16, B)

    y = jnp.maximum(y, 0.0)                                # relu
    out_ref[...] = jax.nn.sigmoid(y)                       # sigmoid (garbage rows = 0.5)


# ------------------------------ wrapper ----------------------------------
def make_forward(conv_w, conv_b, lin_w, lin_b, b_tile=B_TILE):
    """Pack the static weight slab ONCE and return a jitted batched forward.

    conv_w: (1,1,12,12), conv_b: (1,), lin_w: (10,2), lin_b: (10,).
    Returned forward maps (N,1,12,15) f32 -> (N,10) f32 (per-sample module forward).
    """
    slab_np = np.zeros((SLAB_ROWS, SLAB_LANES), np.float32)
    cw = np.asarray(conv_w, np.float32)[0, 0]                        # (12, 12)
    w0 = np.zeros((H, W), np.float32)
    w0[:, 0:K] = cw                                                  # window @ col 0
    w1 = np.zeros((H, W), np.float32)
    w1[:, STRIDE:STRIDE + K] = cw                                    # window @ col 3
    slab_np[0:HW, 0] = w0.reshape(-1)
    slab_np[0:HW, 1] = w1.reshape(-1)
    slab_np[LIN_ROW0:LIN_ROW0 + LIN_OUT, 0] = np.asarray(lin_w, np.float32)[:, 0]
    slab_np[LIN_ROW0:LIN_ROW0 + LIN_OUT, 1] = np.asarray(lin_w, np.float32)[:, 1]
    slab_np[LIN_ROW0:LIN_ROW0 + LIN_OUT, 2] = np.asarray(lin_b, np.float32)
    slab_np[CB_ROW0, 0] = float(np.asarray(conv_b, np.float32)[0])
    slab = jnp.asarray(slab_np)                                      # device constant

    @jax.jit
    def forward(x_n1hw):
        n = x_n1hw.shape[0]
        n_pad = ((n + b_tile - 1) // b_tile) * b_tile
        # lane-dense sample packing: (N,1,12,15) -> (180, N) -> pad to (184, n_pad)
        xt = x_n1hw.reshape(n, HW).T
        xt = jnp.pad(xt, ((0, X_ROWS - HW), (0, n_pad - n)))

        out = pl.pallas_call(
            fused_kernel,
            out_shape=jax.ShapeDtypeStruct((OUT_ROWS, n_pad), jnp.float32),
            grid=(n_pad // b_tile,),
            in_specs=[
                pl.BlockSpec((X_ROWS, b_tile), lambda b: (0, b)),
                pl.BlockSpec((SLAB_ROWS, SLAB_LANES), lambda b: (0, 0)),  # fetched once
            ],
            out_specs=pl.BlockSpec((OUT_ROWS, b_tile), lambda b: (0, b)),
            compiler_params=pltpu.CompilerParams(
                dimension_semantics=("parallel",),        # shard batch axis on v7x 2-TC
                vmem_limit_bytes=32 << 20,
            ),
        )(xt, slab)
        return out[:LIN_OUT, :n].T                                   # (N, 10)

    return forward


# ----------------------------- reference ---------------------------------
def ref_forward(x_n1hw, conv_w, conv_b, lin_w, lin_b):
    v1 = jax.lax.conv_general_dilated(
        x_n1hw, conv_w, (STRIDE, STRIDE), "VALID",
        dimension_numbers=("NCHW", "OIHW", "NCHW"),
    ) + conv_b.reshape(1, -1, 1, 1)
    v2 = jnp.maximum(v1, 0.0)
    v3 = v2.reshape(v2.shape[0], -1)          # per-sample flatten (== torch.flatten for N=1)
    v4 = v3 @ lin_w.T + lin_b
    v5 = jnp.maximum(v4, 0.0)
    v6 = jax.nn.sigmoid(v5)
    return v6


# -------------------------------- main ------------------------------------
if __name__ == "__main__":
    key = jax.random.PRNGKey(0)
    k_x, k_cw, k_cb, k_lw, k_lb = jax.random.split(key, 5)

    N = 256                                    # two 128-lane tiles -> exercises the grid
    x = jax.random.normal(k_x, (N, 1, H, W), dtype=jnp.float32)

    # deterministic PyTorch-style uniform init
    cbound = 1.0 / np.sqrt(1 * K * K)
    conv_w = jax.random.uniform(k_cw, (1, 1, K, K), jnp.float32, -cbound, cbound)
    conv_b = jax.random.uniform(k_cb, (1,), jnp.float32, -cbound, cbound)
    lbound = 1.0 / np.sqrt(FLAT)
    lin_w = jax.random.uniform(k_lw, (LIN_OUT, FLAT), jnp.float32, -lbound, lbound)
    lin_b = jax.random.uniform(k_lb, (LIN_OUT,), jnp.float32, -lbound, lbound)

    forward = make_forward(conv_w, conv_b, lin_w, lin_b)
    out = forward(x)
    jax.block_until_ready(out)

    ref = ref_forward(x, conv_w, conv_b, lin_w, lin_b)
    np.testing.assert_allclose(np.asarray(out), np.asarray(ref), rtol=1e-5, atol=1e-5)

    print("KERNEL_OK")
</pallas_src>

<mosaic_0001>
module attributes {stable_mosaic.version = 11 : i64} {
  func.func @fused_kernel(%arg0: i32, %arg1: memref<184x128xf32, #tpu.memory_space<vmem>>, %arg2: memref<208x128xf32, #tpu.memory_space<vmem>>, %arg3: memref<16x128xf32, #tpu.memory_space<vmem>>) attributes {dimension_semantics = [#tpu.dimension_semantics<parallel>], iteration_bounds = array<i64: 2>, scalar_prefetch = 0 : i64, scratch_operands = 0 : i64, tpu.core_type = #tpu.core_type<tc>, window_params = [{transform_indices = @transform_0, window_bounds = array<i64: 184, 128>}, {pipeline_mode = #tpu.pipeline_mode<synchronous>, transform_indices = @transform_1, window_bounds = array<i64: 208, 128>}, {transform_indices = @transform_2, window_bounds = array<i64: 16, 128>}]} {
    %c0 = arith.constant 0 : index
    %c0_0 = arith.constant 0 : index
    %0 = vector.load %arg1[%c0, %c0_0] : memref<184x128xf32, #tpu.memory_space<vmem>>, vector<184x128xf32>
    %c0_1 = arith.constant 0 : index
    %c0_2 = arith.constant 0 : index
    %1 = vector.load %arg2[%c0_1, %c0_2] : memref<208x128xf32, #tpu.memory_space<vmem>>, vector<184x1xf32>
    %c0_3 = arith.constant 0 : index
    %c1 = arith.constant 1 : index
    %2 = vector.load %arg2[%c0_3, %c1] : memref<208x128xf32, #tpu.memory_space<vmem>>, vector<184x1xf32>
    %c200 = arith.constant 200 : index
    %c0_4 = arith.constant 0 : index
    %3 = vector.load %arg2[%c200, %c0_4] : memref<208x128xf32, #tpu.memory_space<vmem>>, vector<1x1xf32>
    %4 = vector.broadcast %1 : vector<184x1xf32> to vector<184x128xf32>
    %5 = arith.mulf %0, %4 : vector<184x128xf32>
    %cst = arith.constant dense<0.000000e+00> : vector<128xf32>
    %6 = vector.multi_reduction <add>, %5, %cst [0] : vector<184x128xf32> to vector<128xf32>
    %7 = vector.shape_cast %6 : vector<128xf32> to vector<1x128xf32>
    %8 = vector.broadcast %3 : vector<1x1xf32> to vector<1x128xf32>
    %9 = arith.addf %7, %8 : vector<1x128xf32>
    %10 = vector.broadcast %2 : vector<184x1xf32> to vector<184x128xf32>
    %11 = arith.mulf %0, %10 : vector<184x128xf32>
    %cst_5 = arith.constant dense<0.000000e+00> : vector<128xf32>
    %12 = vector.multi_reduction <add>, %11, %cst_5 [0] : vector<184x128xf32> to vector<128xf32>
    %13 = vector.shape_cast %12 : vector<128xf32> to vector<1x128xf32>
    %14 = vector.broadcast %3 : vector<1x1xf32> to vector<1x128xf32>
    %15 = arith.addf %13, %14 : vector<1x128xf32>
    %cst_6 = arith.constant 0.000000e+00 : f32
    %16 = vector.broadcast %cst_6 : f32 to vector<1x128xf32>
    %17 = arith.maximumf %9, %16 : vector<1x128xf32>
    %cst_7 = arith.constant 0.000000e+00 : f32
    %18 = vector.broadcast %cst_7 : f32 to vector<1x128xf32>
    %19 = arith.maximumf %15, %18 : vector<1x128xf32>
    %c184 = arith.constant 184 : index
    %c0_8 = arith.constant 0 : index
    %20 = vector.load %arg2[%c184, %c0_8] : memref<208x128xf32, #tpu.memory_space<vmem>>, vector<16x1xf32>
    %c184_9 = arith.constant 184 : index
    %c1_10 = arith.constant 1 : index
    %21 = vector.load %arg2[%c184_9, %c1_10] : memref<208x128xf32, #tpu.memory_space<vmem>>, vector<16x1xf32>
    %c184_11 = arith.constant 184 : index
    %c2 = arith.constant 2 : index
    %22 = vector.load %arg2[%c184_11, %c2] : memref<208x128xf32, #tpu.memory_space<vmem>>, vector<16x1xf32>
    %23 = vector.broadcast %20 : vector<16x1xf32> to vector<16x128xf32>
    %24 = vector.broadcast %17 : vector<1x128xf32> to vector<16x128xf32>
    %25 = arith.mulf %23, %24 : vector<16x128xf32>
    %26 = vector.broadcast %21 : vector<16x1xf32> to vector<16x128xf32>
    %27 = vector.broadcast %19 : vector<1x128xf32> to vector<16x128xf32>
    %28 = arith.mulf %26, %27 : vector<16x128xf32>
    %29 = arith.addf %25, %28 : vector<16x128xf32>
    %30 = vector.broadcast %22 : vector<16x1xf32> to vector<16x128xf32>
    %31 = arith.addf %29, %30 : vector<16x128xf32>
    %cst_12 = arith.constant 0.000000e+00 : f32
    %32 = vector.broadcast %cst_12 : f32 to vector<16x128xf32>
    %33 = arith.maximumf %31, %32 : vector<16x128xf32>
    %34 = arith.negf %33 : vector<16x128xf32>
    %35 = math.exp %34 : vector<16x128xf32>
    %cst_13 = arith.constant 1.000000e+00 : f32
    %36 = vector.broadcast %cst_13 : f32 to vector<16x128xf32>
    %37 = arith.addf %36, %35 : vector<16x128xf32>
    %38 = arith.divf %36, %37 : vector<16x128xf32>
    %c0_14 = arith.constant 0 : index
    %c0_15 = arith.constant 0 : index
    %39 = vector.load %arg3[%c0_14, %c0_15] : memref<16x128xf32, #tpu.memory_space<vmem>>, vector<16x128xf32>
    tpu.vector_store %arg3[%c0_14, %c0_15], %38 {strides = array<i32>} : memref<16x128xf32, #tpu.memory_space<vmem>>, vector<16x128xf32>,
    return
  }
  func.func @transform_0(%arg0: i32) -> (i32, i32) {
    %c0_i32 = arith.constant 0 : i32
    %c0_i32_0 = arith.constant 0 : i32
    return %c0_i32, %arg0 : i32, i32
  }
  func.func @transform_1(%arg0: i32) -> (i32, i32) {
    %c0_i32 = arith.constant 0 : i32
    %c0_i32_0 = arith.constant 0 : i32
    %c0_i32_1 = arith.constant 0 : i32
    return %c0_i32, %c0_i32_0 : i32, i32
  }
  func.func @transform_2(%arg0: i32) -> (i32, i32) {
    %c0_i32 = arith.constant 0 : i32
    %c0_i32_0 = arith.constant 0 : i32
    return %c0_i32, %arg0 : i32, i32
  }
}

</mosaic_0001>

<bundles_post_ra>
// kernel: forward.1
= control target key start
LH: loop header
LB: loop body
LE: loop exit
PB: predicated region body
PF: predicated region fallthrough
CT: control target
= control target key end

     0   :  { %s890_s9 = smov 0   ;;  %s892_s10 = smov 0   ;;  %s1123_s0 = inlined_call_operand.vmem [shape: f32[184,256], index: 0, kind: input, shape index: {}]   ;;  %s1124_s1 = inlined_call_operand.vmem [shape: f32[208,128], index: 1, kind: input, shape index: {}]   ;;  %s1125_s2 = inlined_call_operand.vmem [shape: f32[16,256], index: 2, kind: output, shape index: {}]  }
   0x1   :  { %s894_s11 = smov 0  }
   0x2 LB: > { %s788_s12 = sadd.s32 4294967295, %s870_s11   ;;  %s907_s13 = sadd.s32 1, %s870_s11   ;;  %s870_s11 = sphi %s894_s11, %s1129_s11   ;;  %s866_s10 = sphi %s892_s10, %s1128_s10   ;;  %s862_s9 = sphi %s890_s9, %s1127_s9  }
   0x3   : > { %s16_s14 = ssub.s32 %s870_s11, %s907_s13  ;;  %s19_s15 = sadd.s32 1, %s866_s10 }
   0x4   : > { %p17_p0 = scmp.eq.s32.totalorder %s16_s14, 0  ;;  %p26_p1 = scmp.ne.s32.totalorder %s866_s10, %s862_s9 }
   0x5   : > { %p27_p2 = scmp.eq.s32.totalorder %s870_s11, 0  ;;  %p77_p3 = scmp.eq.s32.totalorder %s788_s12, 1 }
   0x6   : > { %s918_s16 = scalar_select %p17_p0, %s866_s10, %s19_s15  }
   0x7   : > { %p28_p4 = por %p27_p2, %p26_p1  ;;  %p920_p5 = por %p77_p3, %p26_p1 }
   0x8   : > { %p791_p6 = scmp.ge.s32.totalorder %s870_s11, 2 }
   0xa   : > { %102 = sbr.rel (%p791_p6) target bundleno = 31 (0x1f), region = 20 }
   0xf   : > { %105 = sbr.rel (!%p28_p4) target bundleno = 31 (0x1f), region = 24  ;;  %s107_s18 = sand.u32 (%p28_p4), 1, %s866_s10  }
  0x10   : > { %s792_s19 = sshll.u32 (%p28_p4), %s870_s11, 3  ;;  %s801_s20 = smul.u32 (%p28_p4), 184, %s107_s18 }
  0x11   : > { %s930_s23 = scalar_lea.vmem (%p28_p4), %s1123_s0, %s792_s19 }
  0x12   : > { %v184_v0 = vld [vmem:[%s930_s23] sm:$0xff] (%p28_p4)  ;;  %v186_v1 = vld [vmem:[%s930_s23 + $0x10] sm:$0xff] (%p28_p4)  ;;  %s938_s24 = scalar_lea.vmem (%p28_p4), [#allocation2], %s801_s20 }
  0x13   : > { %v188_v2 = vld [vmem:[%s930_s23 + $0x20] sm:$0xff] (%p28_p4)  ;;  %v190_v3 = vld [vmem:[%s930_s23 + $0x30] sm:$0xff] (%p28_p4)  ;;  %185 = vst [vmem:[%s938_s24] sm:$0xff] (%p28_p4), %v184_v0  ;;  %187 = vst [vmem:[%s938_s24 + $0x8] sm:$0xff] (%p28_p4), %v186_v1 }
  0x14   : > { %v192_v4 = vld [vmem:[%s930_s23 + $0x40] sm:$0xff]  ;;  %v194_v5 = vld [vmem:[%s930_s23 + $0x50] sm:$0xff]  ;;  %189 = vst [vmem:[%s938_s24 + $0x10] sm:$0xff] %v188_v2  ;;  %191 = vst [vmem:[%s938_s24 + $0x18] sm:$0xff] %v190_v3 }
  0x15   : > { %193 = vst [vmem:[%s938_s24 + $0x20] sm:$0xff] %v192_v4  ;;  %195 = vst [vmem:[%s938_s24 + $0x28] sm:$0xff] %v194_v5  ;;  %v196_v6 = vld [vmem:[%s930_s23 + $0x60] sm:$0xff]  ;;  %v198_v7 = vld [vmem:[%s930_s23 + $0x70] sm:$0xff] }
  0x16   : > { %v200_v8 = vld [vmem:[%s930_s23 + $0x80] sm:$0xff]  ;;  %197 = vst [vmem:[%s938_s24 + $0x30] sm:$0xff] %v196_v6  ;;  %199 = vst [vmem:[%s938_s24 + $0x38] sm:$0xff] %v198_v7  ;;  %v202_v9 = vld [vmem:[%s930_s23 + $0x90] sm:$0xff] }
  0x17   : > { %201 = vst [vmem:[%s938_s24 + $0x40] sm:$0xff] %v200_v8  ;;  %v204_v10 = vld [vmem:[%s930_s23 + $0xa0] sm:$0xff]  ;;  %v206_v11 = vld [vmem:[%s930_s23 + $0xb0] sm:$0xff]  ;;  %203 = vst [vmem:[%s938_s24 + $0x48] sm:$0xff] %v202_v9 }
  0x18   : > { %205 = vst [vmem:[%s938_s24 + $0x50] sm:$0xff] %v204_v10  ;;  %207 = vst [vmem:[%s938_s24 + $0x58] sm:$0xff] %v206_v11  ;;  %v208_v12 = vld [vmem:[%s930_s23 + $0xc0] sm:$0xff]  ;;  %v210_v13 = vld [vmem:[%s930_s23 + $0xd0] sm:$0xff] }
  0x19   : > { %v212_v14 = vld [vmem:[%s930_s23 + $0xe0] sm:$0xff]  ;;  %209 = vst [vmem:[%s938_s24 + $0x60] sm:$0xff] %v208_v12  ;;  %211 = vst [vmem:[%s938_s24 + $0x68] sm:$0xff] %v210_v13  ;;  %v214_v15 = vld [vmem:[%s930_s23 + $0xf0] sm:$0xff] }
  0x1a   : > { %213 = vst [vmem:[%s938_s24 + $0x70] sm:$0xff] %v212_v14  ;;  %v216_v16 = vld [vmem:[%s930_s23 + $0x100] sm:$0xff]  ;;  %v218_v17 = vld [vmem:[%s930_s23 + $0x110] sm:$0xff]  ;;  %215 = vst [vmem:[%s938_s24 + $0x78] sm:$0xff] %v214_v15 }
  0x1b   : > { %217 = vst [vmem:[%s938_s24 + $0x80] sm:$0xff] %v216_v16  ;;  %219 = vst [vmem:[%s938_s24 + $0x88] sm:$0xff] %v218_v17  ;;  %v220_v18 = vld [vmem:[%s930_s23 + $0x120] sm:$0xff]  ;;  %v222_v19 = vld [vmem:[%s930_s23 + $0x130] sm:$0xff] }
  0x1c   : > { %v224_v20 = vld [vmem:[%s930_s23 + $0x140] sm:$0xff]  ;;  %221 = vst [vmem:[%s938_s24 + $0x90] sm:$0xff] %v220_v18  ;;  %223 = vst [vmem:[%s938_s24 + $0x98] sm:$0xff] %v222_v19  ;;  %v226_v21 = vld [vmem:[%s930_s23 + $0x150] sm:$0xff] }
  0x1d   : > { %225 = vst [vmem:[%s938_s24 + $0xa0] sm:$0xff] %v224_v20  ;;  %v228_v22 = vld [vmem:[%s930_s23 + $0x160] sm:$0xff]  ;;  %227 = vst [vmem:[%s938_s24 + $0xa8] sm:$0xff] %v226_v21 }
  0x1e   : > { %229 = vst [vmem:[%s938_s24 + $0xb0] sm:$0xff] %v228_v22 }
  0x1f PF: > { %p793_p7 = scmp.ge.s32.totalorder %s870_s11, 1  ;;  %p234_p8 = scmp.lt.s32.totalorder %s870_s11, 3 }
  0x21   : > { %p235_p9 = pnand %p793_p7, %p234_p8 }
  0x22   : > { %s241_s7 = sand.u32 (!%p235_p9), 1, %s862_s9  }
  0x23   : > { %238 = sbr.rel (%p235_p9) target bundleno = 328 (0x148), region = 62  ;;  %s794_s15 = sshll.u32 (!%p235_p9), %s241_s7, 4 }
  0x24   : > { %s802_s8 = smul.u32 (!%p235_p9), 184, %s241_s7  ;;  %s260_s18 = scalar_lea.vmem (!%p235_p9), [#allocation3], %s794_s15 }
  0x26   : > { %s1075_s14 = scalar_lea.vmem (!%p235_p9), [#allocation2], %s802_s8 }
  0x28   : > { %v286_v23 = vld [vmem:[%s1124_s1 + $0x10] sm:$0xff]  ;;  %v284_v24 = vld [vmem:[%s1124_s1] sm:$0xff]  ;;  %v872_v25 = vmov 0   ;;  %v287_v26 = vld [vmem:[%s1124_s1 + $0x18] sm:$0xff]  ;;  %v873_v36 = vmov 1   ;;  %v874_v51 = vmov 2  }
  0x29   : > { %831 = vset.pattern.permute.xlu1 %v872_v25  ;;  %830 = vset.pattern.permute.xlu0 %v872_v25  ;;  %v285_v27 = vld [vmem:[%s1124_s1 + $0x8] sm:$0xff]  ;;  %v288_v29 = vld [vmem:[%s1124_s1 + $0x20] sm:$0xff]  ;;  %v291_v30 = vld [vmem:[%s1124_s1 + $0x38] sm:$0xff]  ;;  %s798_s19 = sshll.u32 (%p920_p5), %s788_s12, 3 }
  0x2a   : > { %320 = vperm.xlu1 %831, %v286_v23   ;;  %310 = vperm.xlu0 %830, %v284_v24   ;;  %v289_v28 = vld [vmem:[%s1124_s1 + $0x28] sm:$0xff]  ;;  %v290_v31 = vld [vmem:[%s1124_s1 + $0x30] sm:$0xff]  ;;  %v292_v33 = vld [vmem:[%s1124_s1 + $0x40] sm:$0xff]  ;;  %s694_s22 = scalar_lea.vmem (%p920_p5), %s1125_s2, %s798_s19 }
  0x2b   : > { %v293_v32 = vld [vmem:[%s1124_s1 + $0x48] sm:$0xff]  ;;  %v295_v34 = vld [vmem:[%s1124_s1 + $0x58] sm:$0xff]  ;;  %v294_v35 = vld [vmem:[%s1124_s1 + $0x50] sm:$0xff] }
  0x2c   : > { %v296_v37 = vld [vmem:[%s1124_s1 + $0x60] sm:$0xff]  ;;  %v297_v38 = vld [vmem:[%s1124_s1 + $0x68] sm:$0xff]  ;;  %v298_v39 = vld [vmem:[%s1124_s1 + $0x70] sm:$0xff] }
  0x2d   : > { %v299_v40 = vld [vmem:[%s1124_s1 + $0x78] sm:$0xff]  ;;  %v300_v41 = vld [vmem:[%s1124_s1 + $0x80] sm:$0xff]  ;;  %v301_v42 = vld [vmem:[%s1124_s1 + $0x88] sm:$0xff] }
  0x2e   : > { %325 = vperm.xlu1 %831, %v287_v26   ;;  %315 = vperm.xlu0 %830, %v285_v27   ;;  %v302_v43 = vld [vmem:[%s1124_s1 + $0x90] sm:$0xff]  ;;  %v303_v44 = vld [vmem:[%s1124_s1 + $0x98] sm:$0xff]  ;;  %v304_v45 = vld [vmem:[%s1124_s1 + $0xa0] sm:$0xff] }
  0x2f   : > { %v305_v46 = vld [vmem:[%s1124_s1 + $0xa8] sm:$0xff]  ;;  %v306_v47 = vld [vmem:[%s1124_s1 + $0xb0] sm:$0xff]  ;;  %v626_v49 = vld [vmem:[%s1124_s1 + $0xb8] sm:$0xff] }
  0x30   : > { %v307_v48 = vld [vmem:[%s1124_s1 + $0xc8] sm:$0x1]  ;;  %v627_v50 = vld [vmem:[%s1124_s1 + $0xc0] sm:$0xff]  ;;  %v264_v16 = vld [vmem:[%s1075_s14 + $0x18] sm:$0xff] }
  0x31   : > { %v262_v0 = vld [vmem:[%s1075_s14 + $0x8] sm:$0xff]  ;;  %v261_v1 = vld [vmem:[%s1075_s14] sm:$0xff]  ;;  %v263_v7 = vld [vmem:[%s1075_s14 + $0x10] sm:$0xff] }
  0x32   : > { %335 = vperm.xlu1 %831, %v289_v28   ;;  %330 = vperm.xlu0 %830, %v288_v29   ;;  %v265_v21 = vld [vmem:[%s1075_s14 + $0x20] sm:$0xff] }
  0x36   : > { %345 = vperm.xlu1 %831, %v291_v30   ;;  %340 = vperm.xlu0 %830, %v290_v31  }
  0x3a   : > { %355 = vperm.xlu1 %831, %v293_v32   ;;  %350 = vperm.xlu0 %830, %v292_v33  }
  0x3e   : > { %365 = vperm.xlu1 %831, %v295_v34   ;;  %360 = vperm.xlu0 %830, %v294_v35  }
  0x42   : > { %833 = vset.pattern.permute.xlu1 %v873_v36  ;;  %832 = vset.pattern.permute.xlu0 %v873_v36 }
  0x43   : > { %485 = vperm.xlu1 %833, %v285_v27   ;;  %481 = vperm.xlu0 %832, %v284_v24  }
  0x47   : > { %489 = vperm.xlu1 %833, %v286_v23   ;;  %493 = vperm.xlu0 %832, %v287_v26  }
  0x4b   : > { %497 = vperm.xlu1 %833, %v288_v29   ;;  %501 = vperm.xlu0 %832, %v289_v28   ;;  %v266_v29 = vld [vmem:[%s1075_s14 + $0x28] sm:$0xff] }
  0x4f   : > { %505 = vperm.xlu1 %833, %v290_v31   ;;  %509 = vperm.xlu0 %832, %v291_v30  }
  0x53   : > { %513 = vperm.xlu1 %833, %v292_v33   ;;  %517 = vperm.xlu0 %832, %v293_v32  }
  0x57   : > { %521 = vperm.xlu1 %833, %v294_v35   ;;  %525 = vperm.xlu0 %832, %v295_v34   ;;  %v267_v35 = vld [vmem:[%s1075_s14 + $0x30] sm:$0xff] }
  0x5b   : > { %834 = vset.pattern.permute.xlu1 %v872_v25  ;;  %529 = vperm.xlu0 %832, %v296_v37  }
  0x5c   : > { %370 = vperm.xlu1 %834, %v296_v37  }
  0x5f   : > { %533 = vperm.xlu0 %832, %v297_v38  }
  0x60   : > { %375 = vperm.xlu1 %834, %v297_v38  }
  0x63   : > { %537 = vperm.xlu0 %832, %v298_v39  }
  0x64   : > { %380 = vperm.xlu1 %834, %v298_v39  }
  0x67   : > { %541 = vperm.xlu0 %832, %v299_v40  }
  0x68   : > { %385 = vperm.xlu1 %834, %v299_v40  }
  0x6b   : > { %545 = vperm.xlu0 %832, %v300_v41  }
  0x6c   : > { %390 = vperm.xlu1 %834, %v300_v41  }
  0x6f   : > { %549 = vperm.xlu0 %832, %v301_v42  }
  0x70   : > { %395 = vperm.xlu1 %834, %v301_v42  }
  0x73   : > { %553 = vperm.xlu0 %832, %v302_v43  }
  0x74   : > { %400 = vperm.xlu1 %834, %v302_v43   ;;  %v268_v43 = vld [vmem:[%s1075_s14 + $0x38] sm:$0xff] }
  0x77   : > { %557 = vperm.xlu0 %832, %v303_v44  }
  0x78   : > { %405 = vperm.xlu1 %834, %v303_v44  }
  0x7b   : > { %561 = vperm.xlu0 %832, %v304_v45  }
  0x7c   : > { %410 = vperm.xlu1 %834, %v304_v45  }
  0x7f   : > { %565 = vperm.xlu0 %832, %v305_v46  }
  0x80   : > { %415 = vperm.xlu1 %834, %v305_v46  }
  0x83   : > { %569 = vperm.xlu0 %832, %v306_v47  }
  0x84   : > { %420 = vperm.xlu1 %834, %v306_v47  }
  0x87   : > { %835 = vset.pattern.permute.xlu0 %v872_v25 }
  0x88   : > { %476 = vperm.xlu1 %834, %v307_v48   ;;  %630 = vperm.xlu0 %835, %v626_v49  }
  0x8c   : > { %635 = vperm.xlu1 %834, %v627_v50   ;;  %837 = vset.pattern.permute.xlu0 %v873_v36 }
  0x8d   : > { %649 = vperm.xlu0 %837, %v627_v50  }
  0x90   : > { %836 = vset.pattern.permute.xlu1 %v873_v36 }
  0x91   : > { %645 = vperm.xlu1 %836, %v626_v49   ;;  %839 = vset.pattern.permute.xlu0 %v874_v51 }
  0x95   : > { %838 = vset.pattern.permute.xlu1 %v874_v51 }
  0x96   : > { %661 = vperm.xlu1 %838, %v626_v49   ;;  %v269_v49 = vld [vmem:[%s1075_s14 + $0x40] sm:$0xff] }
  0x9a   : > { %665 = vperm.xlu1 %838, %v627_v50  }
  0xa5   : > { %v321_v52 = vpop.permute.xlu1 %320  ;;  %v311_v53 = vpop.permute.xlu0 %310 }
  0xa6   : > { %v423_v8 = vmul.f32 %v311_v53, %v261_v1  ;;  %v425_v15 = vmul.f32 %v321_v52, %v263_v7 }
  0xa9   : > { %v326_v54 = vpop.permute.xlu1 %325  ;;  %v316_v55 = vpop.permute.xlu0 %315 }
  0xaa   : > { %v424_v6 = vmul.f32 %v316_v55, %v262_v0  ;;  %v426_v24 = vmul.f32 %v326_v54, %v264_v16 }
  0xac   : > { %v446_v13 = vadd.f32 %v424_v6, %v423_v8 }
  0xad   : > { %v336_v56 = vpop.permute.xlu1 %335  ;;  %v331_v57 = vpop.permute.xlu0 %330 }
  0xae   : > { %v447_v20 = vadd.f32 %v446_v13, %v425_v15  ;;  %v427_v30 = vmul.f32 %v331_v57, %v265_v21  ;;  %v428_v38 = vmul.f32 %v336_v56, %v266_v29  ;;  %v270_v57 = vld [vmem:[%s1075_s14 + $0x48] sm:$0xff]  ;;  %v273_v13 = vld [vmem:[%s1075_s14 + $0x60] sm:$0xff] }
  0xb0   : > { %v448_v27 = vadd.f32 %v447_v20, %v426_v24 }
  0xb1   : > { %v346_v58 = vpop.permute.xlu1 %345  ;;  %v341_v59 = vpop.permute.xlu0 %340 }
  0xb2   : > { %v449_v34 = vadd.f32 %v448_v27, %v427_v30  ;;  %v429_v44 = vmul.f32 %v341_v59, %v267_v35  ;;  %v430_v52 = vmul.f32 %v346_v58, %v268_v43 }
  0xb4   : > { %v450_v41 = vadd.f32 %v449_v34, %v428_v38 }
  0xb5   : > { %v1065_v60 = vpop.permute.xlu1 %355  ;;  %v1067_v61 = vpop.permute.xlu0 %350 }
  0xb6   : > { %v451_v48 = vadd.f32 %v450_v41, %v429_v44 }
  0xb8   : > { %v452_v55 = vadd.f32 %v451_v48, %v430_v52 }
  0xb9   : > { %v1071_v62 = vpop.permute.xlu1 %365  ;;  %v1073_v63 = vpop.permute.xlu0 %360 }
  0xbe   : > { %v486_v2 = vpop.permute.xlu1 %485  ;;  %v482_v3 = vpop.permute.xlu0 %481 }
  0xbf   : > { %v573_v4 = vmul.f32 %v486_v2, %v262_v0  ;;  %v572_v5 = vmul.f32 %v482_v3, %v261_v1  ;;  %v431_v0 = vmul.f32 %v1067_v61, %v269_v49 }
  0xc1   : > { %v595_v11 = vadd.f32 %v573_v4, %v572_v5  ;;  %v453_v3 = vadd.f32 %v452_v55, %v431_v0  ;;  %v271_v4 = vld [vmem:[%s1075_s14 + $0x50] sm:$0xff]  ;;  %v281_v55 = vld [vmem:[%s1075_s14 + $0xa0] sm:$0xff] }
  0xc2   : > { %v490_v9 = vpop.permute.xlu1 %489  ;;  %v494_v10 = vpop.permute.xlu0 %493 }
  0xc3   : > { %v574_v12 = vmul.f32 %v490_v9, %v263_v7  ;;  %v575_v19 = vmul.f32 %v494_v10, %v264_v16  ;;  %v432_v7 = vmul.f32 %v1065_v60, %v270_v57 }
  0xc5   : > { %v596_v14 = vadd.f32 %v595_v11, %v574_v12  ;;  %v454_v9 = vadd.f32 %v453_v3, %v432_v7  ;;  %v272_v11 = vld [vmem:[%s1075_s14 + $0x58] sm:$0xff]  ;;  %v433_v12 = vmul.f32 %v1073_v63, %v271_v4 }
  0xc6   : > { %v498_v17 = vpop.permute.xlu1 %497  ;;  %v502_v18 = vpop.permute.xlu0 %501  ;;  %v434_v60 = vmul.f32 %v1071_v62, %v272_v11 }
  0xc7   : > { %v597_v22 = vadd.f32 %v596_v14, %v575_v19  ;;  %v576_v23 = vmul.f32 %v498_v17, %v265_v21  ;;  %v577_v33 = vmul.f32 %v502_v18, %v266_v29  ;;  %v455_v16 = vadd.f32 %v454_v9, %v433_v12  ;;  %v274_v17 = vld [vmem:[%s1075_s14 + $0x68] sm:$0xff]  ;;  %v275_v21 = vld [vmem:[%s1075_s14 + $0x70] sm:$0xff] }
  0xc8   : > { %v283_v12 = vld [vmem:[%s1075_s14 + $0xb0] sm:$0xff] }
  0xc9   : > { %v598_v28 = vadd.f32 %v597_v22, %v576_v23 }
  0xca   : > { %v506_v25 = vpop.permute.xlu1 %505  ;;  %v510_v26 = vpop.permute.xlu0 %509 }
  0xcb   : > { %v599_v36 = vadd.f32 %v598_v28, %v577_v33  ;;  %v578_v37 = vmul.f32 %v506_v25, %v267_v35  ;;  %v579_v46 = vmul.f32 %v510_v26, %v268_v43  ;;  %v456_v25 = vadd.f32 %v455_v16, %v434_v60  ;;  %v276_v26 = vld [vmem:[%s1075_s14 + $0x78] sm:$0xff] }
  0xcd   : > { %v600_v42 = vadd.f32 %v599_v36, %v578_v37  ;;  %v278_v37 = vld [vmem:[%s1075_s14 + $0x88] sm:$0xff] }
  0xce   : > { %v514_v31 = vpop.permute.xlu1 %513  ;;  %v518_v32 = vpop.permute.xlu0 %517 }
  0xcf   : > { %v601_v50 = vadd.f32 %v600_v42, %v579_v46  ;;  %v580_v51 = vmul.f32 %v514_v31, %v269_v49  ;;  %v581_v59 = vmul.f32 %v518_v32, %v270_v57  ;;  %v277_v31 = vld [vmem:[%s1075_s14 + $0x80] sm:$0xff]  ;;  %v279_v42 = vld [vmem:[%s1075_s14 + $0x90] sm:$0xff]  ;;  %v280_v49 = vld [vmem:[%s1075_s14 + $0x98] sm:$0xff] }
  0xd1   : > { %v602_v56 = vadd.f32 %v601_v50, %v580_v51 }
  0xd2   : > { %v522_v39 = vpop.permute.xlu1 %521  ;;  %v526_v40 = vpop.permute.xlu0 %525 }
  0xd3   : > { %v603_v5 = vadd.f32 %v602_v56, %v581_v59  ;;  %v582_v6 = vmul.f32 %v522_v39, %v271_v4  ;;  %v583_v14 = vmul.f32 %v526_v40, %v272_v11 }
  0xd5   : > { %v604_v10 = vadd.f32 %v603_v5, %v582_v6 }
  0xd6   : > { %v530_v45 = vpop.permute.xlu0 %529 }
  0xd7   : > { %v371_v47 = vpop.permute.xlu1 %370  ;;  %v605_v18 = vadd.f32 %v604_v10, %v583_v14  ;;  %v584_v19 = vmul.f32 %v530_v45, %v273_v13 }
  0xd8   : > { %v435_v20 = vmul.f32 %v371_v47, %v273_v13 }
  0xd9   : > { %v606_v27 = vadd.f32 %v605_v18, %v584_v19 }
  0xda   : > { %v534_v53 = vpop.permute.xlu0 %533  ;;  %v457_v29 = vadd.f32 %v456_v25, %v435_v20 }
  0xdb   : > { %v376_v54 = vpop.permute.xlu1 %375  ;;  %v585_v23 = vmul.f32 %v534_v53, %v274_v17 }
  0xdc   : > { %v436_v63 = vmul.f32 %v376_v54, %v274_v17 }
  0xdd   : > { %v607_v33 = vadd.f32 %v606_v27, %v585_v23 }
  0xde   : > { %v538_v1 = vpop.permute.xlu0 %537  ;;  %v458_v35 = vadd.f32 %v457_v29, %v436_v63 }
  0xdf   : > { %v381_v2 = vpop.permute.xlu1 %380  ;;  %v586_v28 = vmul.f32 %v538_v1, %v275_v21 }
  0xe0   : > { %v437_v30 = vmul.f32 %v381_v2, %v275_v21  ;;  %v282_v2 = vld [vmem:[%s1075_s14 + $0xa8] sm:$0xff] }
  0xe1   : > { %v608_v38 = vadd.f32 %v607_v33, %v586_v28 }
  0xe2   : > { %v542_v58 = vpop.permute.xlu0 %541  ;;  %v459_v40 = vadd.f32 %v458_v35, %v437_v30 }
  0xe3   : > { %v386_v8 = vpop.permute.xlu1 %385  ;;  %v587_v34 = vmul.f32 %v542_v58, %v276_v26 }
  0xe4   : > { %v438_v36 = vmul.f32 %v386_v8, %v276_v26  ;;  %v638_v26 = vlaneseq }
  0xe5   : > { %v609_v44 = vadd.f32 %v608_v38, %v587_v34 }
  0xe6   : > { %v546_v61 = vpop.permute.xlu0 %545  ;;  %v460_v47 = vadd.f32 %v459_v40, %v438_v36 }
  0xe7   : > { %v391_v15 = vpop.permute.xlu1 %390  ;;  %v588_v39 = vmul.f32 %v546_v61, %v277_v31 }
  0xe8   : > { %v439_v41 = vmul.f32 %v391_v15, %v277_v31 }
  0xe9   : > { %v610_v50 = vadd.f32 %v609_v44, %v588_v39 }
  0xea   : > { %v550_v22 = vpop.permute.xlu0 %549  ;;  %v461_v52 = vadd.f32 %v460_v47, %v439_v41 }
  0xeb   : > { %v396_v24 = vpop.permute.xlu1 %395  ;;  %v589_v45 = vmul.f32 %v550_v22, %v278_v37 }
  0xec   : > { %v440_v48 = vmul.f32 %v396_v24, %v278_v37 }
  0xed   : > { %v611_v56 = vadd.f32 %v610_v50, %v589_v45 }
  0xee   : > { %v554_v32 = vpop.permute.xlu0 %553  ;;  %v462_v1 = vadd.f32 %v461_v52, %v440_v48 }
  0xef   : > { %v401_v62 = vpop.permute.xlu1 %400  ;;  %v590_v51 = vmul.f32 %v554_v32, %v279_v42  ;;  %v639_v32 = vshrl.u32 %v638_v26, 7 }
  0xf0   : > { %v441_v53 = vmul.f32 %v401_v62, %v279_v42 }
  0xf1   : > { %v612_v3 = vadd.f32 %v611_v56, %v590_v51  ;;  %v640_v38 = vsub.s32 0, %v639_v32 }
  0xf2   : > { %v558_v43 = vpop.permute.xlu0 %557  ;;  %v463_v5 = vadd.f32 %v462_v1, %v441_v53 }
  0xf3   : > { %v406_v46 = vpop.permute.xlu1 %405  ;;  %v591_v57 = vmul.f32 %v558_v43, %v280_v49 }
  0xf4   : > { %v442_v59 = vmul.f32 %v406_v46, %v280_v49 }
  0xf5   : > { %v613_v58 = vadd.f32 %v612_v3, %v591_v57 }
  0xf6   : > { %v562_v54 = vpop.permute.xlu0 %561  ;;  %v464_v10 = vadd.f32 %v463_v5, %v442_v59 }
  0xf7   : > { %v411_v0 = vpop.permute.xlu1 %410  ;;  %v592_v4 = vmul.f32 %v562_v54, %v281_v55 }
  0xf8   : > { %v443_v6 = vmul.f32 %v411_v0, %v281_v55 }
  0xf9   : > { %v614_v13 = vadd.f32 %v613_v58, %v592_v4 }
  0xfa   : > { %v566_v7 = vpop.permute.xlu0 %565  ;;  %v465_v61 = vadd.f32 %v464_v10, %v443_v6 }
  0xfb   : > { %v593_v8 = vmul.f32 %v566_v7, %v282_v2  ;;  %v416_v9 = vpop.permute.xlu1 %415 }
  0xfc   : > { %v444_v11 = vmul.f32 %v416_v9, %v282_v2 }
  0xfd   : > { %v615_v15 = vadd.f32 %v614_v13, %v593_v8 }
  0xfe   : > { %v570_v14 = vpop.permute.xlu0 %569  ;;  %v466_v18 = vadd.f32 %v465_v61, %v444_v11 }
  0xff   : > { %v594_v16 = vmul.f32 %v570_v14, %v283_v12  ;;  %v421_v17 = vpop.permute.xlu1 %420 }
 0x100   : > { %v445_v19 = vmul.f32 %v421_v17, %v283_v12 }
 0x101   : > { %v616_v60 = vadd.f32 %v615_v15, %v594_v16 }
 0x102   : > { %v467_v20 = vadd.f32 %v466_v18, %v445_v19 }
 0x103   : > { %v617_v21 = vrot.slane %v616_v60, 4  ;;  %v477_v22 = vpop.permute.xlu1 %476  ;;  %v631_v34 = vpop.permute.xlu0 %630 }
 0x104   : > { %v468_v23 = vrot.slane %v467_v20, 4 }
 0x105   : > { %v618_v24 = vadd.f32 %v617_v21, %v616_v60 }
 0x106   : > { %v469_v25 = vadd.f32 %v468_v23, %v467_v20 }
 0x107   : > { %v619_v63 = vrot.slane %v618_v24, 2  ;;  %v636_v29 = vpop.permute.xlu1 %635 }
 0x108   : > { %v470_v27 = vrot.slane %v469_v25, 2  ;;  %v650_v42 = vpop.permute.xlu0 %649 }
 0x109   : > { %v620_v28 = vadd.f32 %v619_v63, %v618_v24 }
 0x10a   : > { %v471_v30 = vadd.f32 %v470_v27, %v469_v25 }
 0x10b   : > { %v621_v31 = vrot.slane %v620_v28, 1 }
 0x10c   : > { %v472_v33 = vrot.slane %v471_v30, 1  ;;  %v646_v35 = vpop.permute.xlu1 %645 }
 0x10d   : > { %v622_v62 = vadd.f32 %v621_v31, %v620_v28 }
 0x10e   : > { %v473_v36 = vadd.f32 %v472_v33, %v471_v30 }
 0x10f   : > { %v623_v37 = vadd.f32 %v622_v62, %v477_v22 }
 0x110   : > { %v479_v39 = vadd.f32 %v477_v22, %v473_v36 }
 0x111   : > { %v625_v40 = vmax.f32 %v623_v37, 0.0  ;;  %v662_v44 = vpop.permute.xlu1 %661 }
 0x112   : > { %v624_v41 = vmax.f32 %v479_v39, 0.0 }
 0x113   : > { %v655_v43 = vrot.slane %v625_v40, %v640_v38 }
 0x114   : > { %v641_v45 = vrot.slane %v624_v41, %v640_v38 }
 0x115   : > { %v656_v46 = vmul.f32 %v655_v43, %v646_v35  ;;  %v657_v47 = vmul.f32 %v655_v43, %v650_v42  ;;  %v666_v52 = vpop.permute.xlu1 %665 }
 0x116   : > { %v643_v48 = vmul.f32 %v641_v45, %v636_v29  ;;  %v642_v49 = vmul.f32 %v641_v45, %v631_v34 }
 0x118   : > { %v658_v50 = vadd.f32 %v656_v46, %v642_v49  ;;  %v659_v51 = vadd.f32 %v657_v47, %v643_v48 }
 0x11a   : > { %v668_v53 = vadd.f32 %v662_v44, %v658_v50  ;;  %v669_v54 = vadd.f32 %v666_v52, %v659_v51 }
 0x11c   : > { %v670_v55 = vmax.f32 %v668_v53, 0.0  ;;  %v671_v56 = vmax.f32 %v669_v54, 0.0 }
 0x11e   : > { %v795_v57 = vmul.f32 -1.442695, %v670_v55  ;;  %v796_v0 = vmul.f32 -1.442695, %v671_v56 }
 0x120   : > { %840 = vpow2.f32 %v795_v57 }
 0x121   : > { %842 = vpow2.f32 %v796_v0 }
 0x12d   : > { %v841_v1 = vpop.eup %840 }
 0x12e   : > { %v843_v59 = vpop.eup %842  ;;  %v678_v2 = vadd.f32 1.0, %v841_v1 }
 0x12f   : > { %v679_v3 = vadd.f32 1.0, %v843_v59 }
 0x130   : > { %844 = vrcp.f32 %v678_v2 }
 0x131   : > { %846 = vrcp.f32 %v679_v3 }
 0x13b   : > { %692 = sbr.rel (!%p920_p5) target bundleno = 328 (0x148), region = 70 }
 0x13d   : > { %v845_v4 = vpop.eup %844 }
 0x13e   : > { %v847_v5 = vpop.eup %846  ;;  %684 = vst [vmem:[%s260_s18] sm:$0xff] %v845_v4 }
 0x13f   : > { %685 = vst [vmem:[%s260_s18 + $0x8] sm:$0xff] %v847_v5 }
 0x145   : > { %v725_v6 = vld [vmem:[%s260_s18] sm:$0xff] }
 0x146   : > { %v727_v7 = vld [vmem:[%s260_s18 + $0x8] sm:$0xff]  ;;  %726 = vst [vmem:[%s694_s22] sm:$0xff] %v725_v6 }
 0x147   : > { %728 = vst [vmem:[%s694_s22 + $0x10] sm:$0xff] %v727_v7 }
 0x148 PF: > { %p9_p10 = scmp.ge.s32.totalorder %s907_s13, 4   ;;  %s1127_s9 = smov %s866_s10 }
 0x149   : > { %s1128_s10 = smov %s918_s16  ;;  %s1129_s11 = smov %s907_s13 }
 0x14a   :  { %11 = sbr.rel (!%p9_p10) target bundleno = 2 (0x2), region = 139 }

</bundles_post_ra>
